<compile_context>
chip_gen: v6e
topology: v6e:2x2x1
jax: 0.10.0
libtpu: 0.0.40
codegen_flags: <defaults>
</compile_context>

<pallas_src>
import jax
import jax.numpy as jnp
from jax.experimental import pallas as pl
from jax.experimental.pallas import tpu as pltpu

NEG_SLOPE = 0.01  # PyTorch nn.LeakyReLU default

# Logical (PyTorch) layer sizes.
D_IN, D_H1, D_H2, D_OUT = 28 * 28, 10 * 10, 5 * 5, 10
# Lane-padded sizes used inside the kernel (padded rows/cols are zero).
P_H1 = 128
P_H2 = 128
P_OUT = 128


def _leaky_relu(x):
    return jnp.where(x > 0, x, NEG_SLOPE * x)


def _round_up(x, m):
    return ((x + m - 1) // m) * m


def classifier_kernel(x_ref, w1_ref, w2_ref, w3_ref, b_ref, o_ref):
    # x_ref: (TB, 784) f32 -> cast to bf16 here (saves a wrapper-side HBM pass).
    x = x_ref[...].astype(jnp.bfloat16)

    b1 = b_ref[0:1, :]   # (1, 128) f32, pads are zero
    b2 = b_ref[1:2, :]
    b3 = b_ref[2:3, :]

    # Linear(784 -> 100) + LeakyReLU   (padded to 128 output lanes)
    h1 = jnp.dot(x, w1_ref[...], preferred_element_type=jnp.float32) + b1
    h1 = _leaky_relu(h1).astype(jnp.bfloat16)

    # Linear(100 -> 25) + LeakyReLU    (padded to 128 output lanes)
    h2 = jnp.dot(h1, w2_ref[...], preferred_element_type=jnp.float32) + b2
    h2 = _leaky_relu(h2).astype(jnp.bfloat16)

    # Linear(25 -> 10)                 (padded to 128 output lanes)
    out = jnp.dot(h2, w3_ref[...], preferred_element_type=jnp.float32) + b3

    o_ref[...] = out.astype(o_ref.dtype)  # bf16 store, lane-dense (no vst.msk)


def classifier_forward(x_nchw, packed_params, *, tb_max=1024):
    """x_nchw: (B, 1, 28, 28) f32 -> logits (B, 10) float32."""
    w1, w2, w3, b_all = packed_params
    B = x_nchw.shape[0]

    # nn.Flatten(): reshape of a contiguous array is a bitcast (no HBM pass).
    x_flat = x_nchw.reshape(B, D_IN)

    # Batch tile: aim for >= 2 grid steps (megacore on v7x), multiple of 16
    # sublanes, capped so the f32 x double buffer fits v5e's 16 MiB scoped VMEM.
    TB = min(tb_max, max(16, _round_up(pl.cdiv(B, 2), 16)))
    grid_b = pl.cdiv(B, TB)  # ragged last tile handled by Pallas (OOB writes dropped)

    flops = 2 * B * (D_IN * P_H1 + P_H1 * P_H2 + P_H2 * P_OUT)
    bytes_accessed = (
        B * D_IN * 4                                       # x (f32, read once)
        + (D_IN * P_H1 + P_H1 * P_H2 + P_H2 * P_OUT) * 2   # weights (bf16)
        + 3 * P_OUT * 4                                    # packed biases (f32)
        + B * P_OUT * 2                                    # output (bf16)
    )

    resident = lambda i: (0, 0)  # weights/biases: same block every grid step

    out_bf16 = pl.pallas_call(
        classifier_kernel,
        out_shape=jax.ShapeDtypeStruct((B, P_OUT), jnp.bfloat16),
        grid_spec=pltpu.PrefetchScalarGridSpec(
            num_scalar_prefetch=0,
            grid=(grid_b,),
            in_specs=[
                pl.BlockSpec((TB, D_IN), lambda i: (i, 0)),   # x tile (pipelined)
                pl.BlockSpec((D_IN, P_H1), resident),         # W1 (bf16)
                pl.BlockSpec((P_H1, P_H2), resident),         # W2 (bf16)
                pl.BlockSpec((P_H2, P_OUT), resident),        # W3 (bf16)
                pl.BlockSpec((3, P_OUT), resident),           # packed biases (f32)
            ],
            out_specs=pl.BlockSpec((TB, P_OUT), lambda i: (i, 0)),
        ),
        compiler_params=pltpu.CompilerParams(
            dimension_semantics=("parallel",),
        ),
        cost_estimate=pl.CostEstimate(
            flops=flops, transcendentals=0, bytes_accessed=bytes_accessed
        ),
    )(x_flat, w1, w2, w3, b_all)

    # Strip lane padding; upcast the tiny (B, 10) slice to f32 for callers.
    return out_bf16[:, :D_OUT].astype(jnp.float32)


def init_params(key):
    """Deterministic f32 params mimicking PyTorch Linear default init
    (U(-1/sqrt(fan_in), 1/sqrt(fan_in))). Weights pre-transposed: (in, out)."""
    dims = [(D_IN, D_H1), (D_H1, D_H2), (D_H2, D_OUT)]
    params = []
    for fan_in, fan_out in dims:
        key, kw, kb = jax.random.split(key, 3)
        bound = float(fan_in) ** -0.5
        w = jax.random.uniform(kw, (fan_in, fan_out), jnp.float32, -bound, bound)
        b = jax.random.uniform(kb, (fan_out,), jnp.float32, -bound, bound)
        params += [w, b]
    return tuple(params)


def pack_params(raw_params):
    """Zero-pad feature dims to lane-dense sizes, cast weights to bf16, and
    pack the three biases into a single (3, 128) f32 array."""
    w1, b1, w2, b2, w3, b3 = raw_params

    w1p = jnp.zeros((D_IN, P_H1), jnp.float32).at[:, :D_H1].set(w1)
    w2p = jnp.zeros((P_H1, P_H2), jnp.float32).at[:D_H1, :D_H2].set(w2)
    w3p = jnp.zeros((P_H2, P_OUT), jnp.float32).at[:D_H2, :D_OUT].set(w3)

    b_all = jnp.zeros((3, P_OUT), jnp.float32)
    b_all = b_all.at[0, :D_H1].set(b1)
    b_all = b_all.at[1, :D_H2].set(b2)
    b_all = b_all.at[2, :D_OUT].set(b3)

    return (
        w1p.astype(jnp.bfloat16),
        w2p.astype(jnp.bfloat16),
        w3p.astype(jnp.bfloat16),
        b_all,  # biases stay f32
    )


def reference_forward(x_nchw, raw_params):
    """Pure-JAX f32 reference for the correctness sanity check."""
    w1, b1, w2, b2, w3, b3 = raw_params
    x = x_nchw.reshape(x_nchw.shape[0], -1).astype(jnp.float32)
    h = _leaky_relu(x @ w1 + b1)
    h = _leaky_relu(h @ w2 + b2)
    return h @ w3 + b3


if __name__ == "__main__":
    key = jax.random.PRNGKey(0)
    key, kx = jax.random.split(key)

    # MNIST-like input implied by Linear(28*28, ...): (B, 1, 28, 28)
    x = jax.random.normal(kx, (2, 1, 28, 28), jnp.float32)

    raw_params = init_params(key)
    packed_params = pack_params(raw_params)

    out = classifier_forward(x, packed_params)
    out = jax.block_until_ready(out)

    ref = reference_forward(x, raw_params)
    assert out.shape == (2, 10)
    # Tolerance covers bf16 weights/activations/output (f32 accumulation).
    assert jnp.allclose(out, ref, atol=5e-2, rtol=5e-2), float(
        jnp.max(jnp.abs(out - ref))
    )

    print("KERNEL_OK")
</pallas_src>

<mosaic_0001>
module attributes {stable_mosaic.version = 11 : i64} {
  func.func @classifier_kernel(%arg0: i32, %arg1: memref<16x784xf32, #tpu.memory_space<vmem>>, %arg2: memref<784x128xbf16, #tpu.memory_space<vmem>>, %arg3: memref<128x128xbf16, #tpu.memory_space<vmem>>, %arg4: memref<128x128xbf16, #tpu.memory_space<vmem>>, %arg5: memref<3x128xf32, #tpu.memory_space<vmem>>, %arg6: memref<16x128xbf16, #tpu.memory_space<vmem>>) attributes {dimension_semantics = [#tpu.dimension_semantics<parallel>], iteration_bounds = array<i64: 1>, scalar_prefetch = 0 : i64, scratch_operands = 0 : i64, tpu.core_type = #tpu.core_type<tc>, window_params = [{transform_indices = @transform_0, window_bounds = array<i64: 16, 784>}, {pipeline_mode = #tpu.pipeline_mode<synchronous>, transform_indices = @transform_1, window_bounds = array<i64: 784, 128>}, {pipeline_mode = #tpu.pipeline_mode<synchronous>, transform_indices = @transform_2, window_bounds = array<i64: 128, 128>}, {pipeline_mode = #tpu.pipeline_mode<synchronous>, transform_indices = @transform_3, window_bounds = array<i64: 128, 128>}, {pipeline_mode = #tpu.pipeline_mode<synchronous>, transform_indices = @transform_4, window_bounds = array<i64: 3, 128>}, {transform_indices = @transform_5, window_bounds = array<i64: 16, 128>}]} {
    %c0 = arith.constant 0 : index
    %c0_0 = arith.constant 0 : index
    %0 = vector.load %arg1[%c0, %c0_0] : memref<16x784xf32, #tpu.memory_space<vmem>>, vector<16x784xf32>
    %1 = arith.truncf %0 : vector<16x784xf32> to vector<16x784xbf16>
    %c0_1 = arith.constant 0 : index
    %c0_2 = arith.constant 0 : index
    %2 = vector.load %arg5[%c0_1, %c0_2] : memref<3x128xf32, #tpu.memory_space<vmem>>, vector<1x128xf32>
    %c1 = arith.constant 1 : index
    %c0_3 = arith.constant 0 : index
    %3 = vector.load %arg5[%c1, %c0_3] : memref<3x128xf32, #tpu.memory_space<vmem>>, vector<1x128xf32>
    %c2 = arith.constant 2 : index
    %c0_4 = arith.constant 0 : index
    %4 = vector.load %arg5[%c2, %c0_4] : memref<3x128xf32, #tpu.memory_space<vmem>>, vector<1x128xf32>
    %c0_5 = arith.constant 0 : index
    %c0_6 = arith.constant 0 : index
    %5 = vector.load %arg2[%c0_5, %c0_6] : memref<784x128xbf16, #tpu.memory_space<vmem>>, vector<784x128xbf16>
    %cst = arith.constant dense<0.000000e+00> : vector<16x128xf32>
    %6 = tpu.matmul %1, %5, %cst {dimension_numbers = #tpu.dot_dimension_numbers<[1], [0], [0], [1], [0, 0, 1, 1], [], []>} : vector<16x784xbf16>, vector<784x128xbf16>, vector<16x128xf32> -> vector<16x128xf32>
    %7 = vector.broadcast %2 : vector<1x128xf32> to vector<16x128xf32>
    %8 = arith.addf %6, %7 : vector<16x128xf32>
    %cst_7 = arith.constant 0.000000e+00 : f32
    %9 = vector.broadcast %cst_7 : f32 to vector<16x128xf32>
    %10 = arith.cmpf ogt, %8, %9 : vector<16x128xf32>
    %cst_8 = arith.constant 0.00999999977 : f32
    %11 = vector.broadcast %cst_8 : f32 to vector<16x128xf32>
    %12 = arith.mulf %11, %8 : vector<16x128xf32>
    %13 = arith.select %10, %8, %12 : vector<16x128xi1>, vector<16x128xf32>
    %14 = arith.truncf %13 : vector<16x128xf32> to vector<16x128xbf16>
    %c0_9 = arith.constant 0 : index
    %c0_10 = arith.constant 0 : index
    %15 = vector.load %arg3[%c0_9, %c0_10] : memref<128x128xbf16, #tpu.memory_space<vmem>>, vector<128x128xbf16>
    %cst_11 = arith.constant dense<0.000000e+00> : vector<16x128xf32>
    %16 = tpu.matmul %14, %15, %cst_11 {dimension_numbers = #tpu.dot_dimension_numbers<[1], [0], [0], [1], [0, 0, 1, 1], [], []>} : vector<16x128xbf16>, vector<128x128xbf16>, vector<16x128xf32> -> vector<16x128xf32>
    %17 = vector.broadcast %3 : vector<1x128xf32> to vector<16x128xf32>
    %18 = arith.addf %16, %17 : vector<16x128xf32>
    %cst_12 = arith.constant 0.000000e+00 : f32
    %19 = vector.broadcast %cst_12 : f32 to vector<16x128xf32>
    %20 = arith.cmpf ogt, %18, %19 : vector<16x128xf32>
    %cst_13 = arith.constant 0.00999999977 : f32
    %21 = vector.broadcast %cst_13 : f32 to vector<16x128xf32>
    %22 = arith.mulf %21, %18 : vector<16x128xf32>
    %23 = arith.select %20, %18, %22 : vector<16x128xi1>, vector<16x128xf32>
    %24 = arith.truncf %23 : vector<16x128xf32> to vector<16x128xbf16>
    %c0_14 = arith.constant 0 : index
    %c0_15 = arith.constant 0 : index
    %25 = vector.load %arg4[%c0_14, %c0_15] : memref<128x128xbf16, #tpu.memory_space<vmem>>, vector<128x128xbf16>
    %cst_16 = arith.constant dense<0.000000e+00> : vector<16x128xf32>
    %26 = tpu.matmul %24, %25, %cst_16 {dimension_numbers = #tpu.dot_dimension_numbers<[1], [0], [0], [1], [0, 0, 1, 1], [], []>} : vector<16x128xbf16>, vector<128x128xbf16>, vector<16x128xf32> -> vector<16x128xf32>
    %27 = vector.broadcast %4 : vector<1x128xf32> to vector<16x128xf32>
    %28 = arith.addf %26, %27 : vector<16x128xf32>
    %29 = arith.truncf %28 : vector<16x128xf32> to vector<16x128xbf16>
    %c0_17 = arith.constant 0 : index
    %c0_18 = arith.constant 0 : index
    %30 = vector.load %arg6[%c0_17, %c0_18] : memref<16x128xbf16, #tpu.memory_space<vmem>>, vector<16x128xbf16>
    tpu.vector_store %arg6[%c0_17, %c0_18], %29 {strides = array<i32>} : memref<16x128xbf16, #tpu.memory_space<vmem>>, vector<16x128xbf16>,
    return
  }
  func.func @transform_0(%arg0: i32) -> (i32, i32) {
    %c0_i32 = arith.constant 0 : i32
    %c0_i32_0 = arith.constant 0 : i32
    return %arg0, %c0_i32 : i32, i32
  }
  func.func @transform_1(%arg0: i32) -> (i32, i32) {
    %c0_i32 = arith.constant 0 : i32
    %c0_i32_0 = arith.constant 0 : i32
    %c0_i32_1 = arith.constant 0 : i32
    return %c0_i32, %c0_i32_0 : i32, i32
  }
  func.func @transform_2(%arg0: i32) -> (i32, i32) {
    %c0_i32 = arith.constant 0 : i32
    %c0_i32_0 = arith.constant 0 : i32
    %c0_i32_1 = arith.constant 0 : i32
    return %c0_i32, %c0_i32_0 : i32, i32
  }
  func.func @transform_3(%arg0: i32) -> (i32, i32) {
    %c0_i32 = arith.constant 0 : i32
    %c0_i32_0 = arith.constant 0 : i32
    %c0_i32_1 = arith.constant 0 : i32
    return %c0_i32, %c0_i32_0 : i32, i32
  }
  func.func @transform_4(%arg0: i32) -> (i32, i32) {
    %c0_i32 = arith.constant 0 : i32
    %c0_i32_0 = arith.constant 0 : i32
    %c0_i32_1 = arith.constant 0 : i32
    return %c0_i32, %c0_i32_0 : i32, i32
  }
  func.func @transform_5(%arg0: i32) -> (i32, i32) {
    %c0_i32 = arith.constant 0 : i32
    %c0_i32_0 = arith.constant 0 : i32
    return %arg0, %c0_i32 : i32, i32
  }
}

</mosaic_0001>

<bundles_post_ra>
// kernel: tpu_custom_call.1
= control target key start
LH: loop header
LB: loop body
LE: loop exit
PB: predicated region body
PF: predicated region fallthrough
CT: control target
= control target key end

     0   :  { %10 = vsyncpa [#allocation3], 0  ;;  %s1699_s0 = inlined_call_operand.hbm [shape: f32[2,784], index: 0, kind: input, shape index: {}]   ;;  %s1700_s1 = inlined_call_operand.hbm [shape: bf16[784,128], index: 1, kind: input, shape index: {}]   ;;  %s1701_s2 = inlined_call_operand.hbm [shape: bf16[128,128], index: 2, kind: input, shape index: {}]   ;;  %s1702_s3 = inlined_call_operand.hbm [shape: bf16[128,128], index: 3, kind: input, shape index: {}]   ;;  %s1703_s4 = inlined_call_operand.vmem [shape: f32[3,128], index: 4, kind: input, shape index: {}]   ;;  %s1704_s5 = inlined_call_operand.hbm [shape: bf16[2,128], index: 5, kind: output, shape index: {}]  }
   0x1   :  { %11 = vsyncpa [#allocation6], 0 }
   0x2   :  { %12 = vsyncpa [#allocation9], 0 }
   0x3   :  { %13 = vsyncpa [#allocation4], 0 }
   0x4   :  { %18 = vsyncadd [#allocation3], 1568  ;;  %s1575_s18 = smov [#allocation5]  }
   0x5   :  { %s31_s19 = sshll.u32 %s1575_s18, 4  ;;  %s32_s19 = int_to_ptr.vmem [resolvable:$true] %s31_s19 }
   0x6   :  { %s1475_s20 = scalar_lea.vmem %s32_s19, 6272  ;;  %p1480_p1 = scmp.lt.s32.totalorder %s32_s19, %s32_s19 }
   0x7   :  { %p1476_p0 = scmp.ne.s32.totalorder %s32_s19, %s1475_s20  ;;  %p1481_p2 = scmp.lt.s32.totalorder %s1475_s20, %s1475_s20 }
   0x9   :  { %p1482_p3 = por %p1481_p2, %p1480_p1 }
   0xb   :  { %p1483_p4 = pnand %p1482_p3, %p1476_p0 }
   0xd   :  { %1486 = shalt.err (!%p1483_p4)
}
   0xe   :  { %s1576_s21 = smov 64   ;;  %s1577_s22 = smov 4  }
   0xf   :  { %37 = dma.hbm_to_vmem [thread:$0]  %s1700_s1, 6272, %s32_s19, [#allocation6], %s1576_s21, %s1576_s21, %s1577_s22  }
  0x10   :  { %s1578_s25 = smov [#allocation2]  }
  0x11   :  { %s19_s26 = sshll.u32 %s1578_s25, 4  ;;  %s20_s26 = int_to_ptr.vmem [resolvable:$true] %s19_s26 }
  0x12   :  { %s1495_s27 = scalar_lea.vmem %s20_s26, 224  ;;  %s1499_s28 = scalar_lea.vmem %s20_s26, 1792 }
  0x13   :  { %p1496_p5 = scmp.ne.s32.totalorder %s20_s26, %s1495_s27  ;;  %p1500_p6 = scmp.lt.s32.totalorder %s20_s26, %s20_s26 }
  0x14   :  { %p1501_p7 = scmp.lt.s32.totalorder %s1499_s28, %s1495_s27 }
  0x16   :  { %p1502_p8 = por %p1501_p7, %p1500_p6 }
  0x18   :  { %p1503_p9 = pnand %p1502_p8, %p1496_p5 }
  0x1a   :  { %1506 = shalt.err (!%p1503_p9)
}
  0x1b   :  { %s1579_s29 = smov 224   ;;  %s1580_s30 = smov 14  }
  0x1c   :  { %25 = dma.hbm_to_vmem [thread:$0]  %s1699_s0, 224, %s20_s26, [#allocation3], %s1579_s29, %s1579_s29, %s1580_s30  }
  0x1d   :  { %s1581_s8 = smov [#allocation7]   ;;  %s1582_s1 = smov [#allocation8]  }
  0x1e   :  { %s43_s9 = sshll.u32 %s1581_s8, 4  ;;  %s55_s10 = sshll.u32 %s1582_s1, 4  ;;  %s44_s9 = int_to_ptr.vmem [resolvable:$true] %s43_s9  ;;  %s56_s10 = int_to_ptr.vmem [resolvable:$true] %s55_s10 }
  0x1f   :  { %s1515_s11 = scalar_lea.vmem %s44_s9, 1024  ;;  %p1520_p11 = scmp.lt.s32.totalorder %s44_s9, %s44_s9 }
  0x20   :  { %p1516_p10 = scmp.ne.s32.totalorder %s44_s9, %s1515_s11  ;;  %p1521_p12 = scmp.lt.s32.totalorder %s1515_s11, %s1515_s11 }
  0x22   :  { %p1522_p13 = por %p1521_p12, %p1520_p11 }
  0x24   :  { %p1523_p0 = pnand %p1522_p13, %p1516_p10 }
  0x26   :  { %1526 = shalt.err (!%p1523_p0)
}
  0x27   :  { %49 = dma.hbm_to_vmem [thread:$0]  %s1701_s2, 1024, %s44_s9, [#allocation6], %s1576_s21, %s1576_s21, %s1577_s22  }
  0x28   :  { %s1535_s0 = scalar_lea.vmem %s56_s10, 1024  ;;  %p1540_p2 = scmp.lt.s32.totalorder %s56_s10, %s56_s10 }
  0x29   :  { %p1536_p1 = scmp.ne.s32.totalorder %s56_s10, %s1535_s0  ;;  %p1541_p3 = scmp.lt.s32.totalorder %s1535_s0, %s1535_s0 }
  0x2b   :  { %p1542_p4 = por %p1541_p3, %p1540_p2 }
  0x2d   :  { %p1543_p5 = pnand %p1542_p4, %p1536_p1 }
  0x2f   :  { %1546 = shalt.err (!%p1543_p5)
}
  0x30   :  { %61 = dma.hbm_to_vmem [thread:$0]  %s1702_s3, 1024, %s56_s10, [#allocation9], %s1576_s21, %s1576_s21, %s1577_s22  }
  0x31   :  { %1567 = dma.done.wait [#allocation3], 1792  }
  0x32   :  { %1568 = vsyncadd [#allocation3], 4294965504 }
  0x33   :  { %1569 = dma.done.wait [#allocation6], 7296  }
  0x34   :  { %1570 = vsyncadd [#allocation6], 4294960000 }
  0x35   :  { %1571 = dma.done.wait [#allocation9], 1024  }
  0x36   :  { %1572 = vsyncadd [#allocation9], 4294966272  ;;  %v1378_v0 = vld [vmem:[#allocation5 + $0x78] sm:$0xff]   ;;  %v1382_v4 = vld [vmem:[#allocation5 + $0x70] sm:$0xff]   ;;  %v1583_v24 = vmov 1983009808   ;;  %v116_v26 = vlaneseq }
  0x37   :  { %v1379_v1 = vld [vmem:[#allocation5 + $0x38] sm:$0xff]   ;;  %1231 = vmatprep.subr.bf16.mxu0 %v1378_v0  ;;  %v1383_v5 = vld [vmem:[#allocation5 + $0x30] sm:$0xff]   ;;  %v1386_v8 = vld [vmem:[#allocation5 + $0x68] sm:$0xff]   ;;  %v114_v25 = vunpack.c.l.s4 %v1583_v24  ;;  %v1584_v58 = vmov 0.0   ;;  %vm1585_vm0 = vmmov 0   ;;  %vm671_vm1 = vcmask 130048  }
  0x38   :  { %v1380_v2 = vld [vmem:[#allocation5 + $0xf8] sm:$0xff]   ;;  %1232 = vmatpush3.bf16.msra.mxu0 %v1379_v1  ;;  %v1384_v6 = vld [vmem:[#allocation5 + $0xf0] sm:$0xff]   ;;  %v1387_v9 = vld [vmem:[#allocation5 + $0x28] sm:$0xff]   ;;  %v1641_v32 = vshrl.u32 %v116_v26, 7 }
  0x39   :  { %v1381_v3 = vld [vmem:[#allocation5 + $0xb8] sm:$0xff]   ;;  %1253 = vmatprep.subr.bf16.mxu1 %v1380_v2  ;;  %1233 = vmatprep.subr.bf16.mxu0 %v1382_v4  ;;  %v1385_v7 = vld [vmem:[#allocation5 + $0xb0] sm:$0xff]   ;;  %v1388_v10 = vld [vmem:[#allocation5 + $0xe8] sm:$0xff]   ;;  %v115_v31 = vunpack.c.0.s8 %v114_v25 }
  0x3a   :  { %1254 = vmatpush3.bf16.msra.mxu1 %v1381_v3  ;;  %v1389_v11 = vld [vmem:[#allocation5 + $0xa8] sm:$0xff]   ;;  %v1390_v12 = vld [vmem:[#allocation5 + $0x60] sm:$0xff]   ;;  %v1394_v16 = vld [vmem:[#allocation5 + $0x58] sm:$0xff]  }
  0x3b   :  { %1255 = vmatprep.subr.bf16.mxu1 %v1384_v6  ;;  %v1391_v13 = vld [vmem:[#allocation5 + $0x20] sm:$0xff]   ;;  %v1395_v17 = vld [vmem:[#allocation5 + $0x18] sm:$0xff]   ;;  %v1398_v20 = vld [vmem:[#allocation5 + $0x50] sm:$0xff]   ;;  %v1644_v36 = vsub.s32 %v115_v31, %v1641_v32 }
  0x3c   :  { %1234 = vmatpush3.bf16.msra.mxu0 %v1383_v5  ;;  %v1392_v14 = vld [vmem:[#allocation5 + $0xe0] sm:$0xff]   ;;  %v1396_v18 = vld [vmem:[#allocation5 + $0xd8] sm:$0xff]   ;;  %v1399_v21 = vld [vmem:[#allocation5 + $0x10] sm:$0xff]  }
  0x3d   :  { %1235 = vmatprep.subr.bf16.mxu0 %v1386_v8  ;;  %v1393_v15 = vld [vmem:[#allocation5 + $0xa0] sm:$0xff]   ;;  %v1397_v19 = vld [vmem:[#allocation5 + $0x98] sm:$0xff]   ;;  %v1400_v22 = vld [vmem:[#allocation5 + $0xd0] sm:$0xff]  }
  0x3e   :  { %1256 = vmatpush3.bf16.msra.mxu1 %v1385_v7  ;;  %v1401_v23 = vld [vmem:[#allocation5 + $0x90] sm:$0xff]   ;;  %v1402_v27 = vld [vmem:[#allocation5 + $0x48] sm:$0xff]   ;;  %v1406_v33 = vld [vmem:[#allocation5 + $0x40] sm:$0xff]  }
  0x3f   :  { %1257 = vmatprep.subr.bf16.mxu1 %v1388_v10  ;;  %v1403_v28 = vld [vmem:[#allocation5 + $0x8] sm:$0xff]   ;;  %v1407_v34 = vld [vmem:[#allocation5] sm:$0xff]   ;;  %v1418_v46 = vld [vmem:[#allocation5 + $0x178] sm:$0xff]  }
  0x40   :  { %1236 = vmatpush3.bf16.msra.mxu0 %v1387_v9  ;;  %v1404_v29 = vld [vmem:[#allocation5 + $0xc8] sm:$0xff]   ;;  %v1408_v35 = vld [vmem:[#allocation5 + $0xc0] sm:$0xff]   ;;  %v1423_v62 = vld [vmem:[#allocation5 + $0x138] sm:$0xff]  }
  0x41   :  { %1237 = vmatprep.subr.bf16.mxu0 %v1390_v12  ;;  %v1405_v30 = vld [vmem:[#allocation5 + $0x88] sm:$0xff]   ;;  %v1409_v37 = vld [vmem:[#allocation2] ss:$14 sps:$4 sm:$0xff]   ;;  %v1419_v47 = vld [vmem:[#allocation2 + $0x4] ss:$14 sps:$4 sm:$0xff]  }
  0x42   :  { %1258 = vmatpush3.bf16.msra.mxu1 %v1389_v11  ;;  %v1411_v38 = vld [vmem:[#allocation2 + $0x1c] ss:$14 sps:$4 sm:$0xff]   ;;  %v1413_v39 = vld [vmem:[#allocation2 + $0x38] ss:$14 sps:$4 sm:$0xff]   ;;  %v1415_v40 = vld [vmem:[#allocation2 + $0x54] ss:$14 sps:$4 sm:$0xff]   ;;  %v119_v41 = vrot.slane %v1409_v37, %v1644_v36  ;;  %v126_v55 = vrot.slane %v1419_v47, %v1644_v36 }
  0x43   :  { %1259 = vmatprep.subr.bf16.mxu1 %v1392_v14  ;;  %v1417_v42 = vld [vmem:[#allocation5 + $0x80] sm:$0xff]   ;;  %v133_v43 = vrot.slane %v1411_v38, %v1644_v36  ;;  %v190_v44 = vrot.slane %v1413_v39, %v1644_v36  ;;  %v204_v45 = vrot.slane %v1415_v40, %v1644_v36  ;;  %v1421_v49 = vld [vmem:[#allocation2 + $0x3c] ss:$14 sps:$4 sm:$0xff]   ;;  %v1422_v54 = vld [vmem:[#allocation2 + $0x58] ss:$14 sps:$4 sm:$0xff]  }
  0x44   :  { %1238 = vmatpush3.bf16.msra.mxu0 %v1391_v13  ;;  %v1420_v48 = vld [vmem:[#allocation2 + $0x20] ss:$14 sps:$4 sm:$0xff]   ;;  %v197_v57 = vrot.slane %v1421_v49, %v1644_v36  ;;  %v211_v61 = vrot.slane %v1422_v54, %v1644_v36  ;;  %v1426_v7 = vld [vmem:[#allocation5 + $0x168] sm:$0xff]  }
  0x45   :  { %1239 = vmatprep.subr.bf16.mxu0 %v1394_v16  ;;  %v142_v50 = vcombine.high %v119_v41, %v133_v43  ;;  %v213_v51 = vcombine.high %v190_v44, %v204_v45  ;;  %v141_v52 = vcombine.low %v119_v41, %v133_v43  ;;  %v212_v53 = vcombine.low %v190_v44, %v204_v45  ;;  %v1424_v1 = vld [vmem:[#allocation5 + $0x170] sm:$0xff]   ;;  %v1427_v8 = vld [vmem:[#allocation5 + $0x128] sm:$0xff]   ;;  %v1428_v9 = vld [vmem:[#allocation5 + $0x160] sm:$0xff]  }
  0x46   :  { %1260 = vmatpush3.bf16.msra.mxu1 %v1393_v15  ;;  %v140_v56 = vrot.slane %v1420_v48, %v1644_v36  ;;  %v215_v2 = vcombine.high %v197_v57, %v211_v61  ;;  %v214_v3 = vcombine.low %v197_v57, %v211_v61  ;;  %v1425_v6 = vld [vmem:[#allocation5 + $0x130] sm:$0xff]   ;;  %v1429_v10 = vld [vmem:[#allocation5 + $0x120] sm:$0xff]   ;;  %v1430_v11 = vld [vmem:[#allocation5 + $0x158] sm:$0xff]  }
  0x47   :  { %1261 = vmatprep.subr.bf16.mxu1 %v1396_v18  ;;  %v266_v59 = vpack.c.bf16 %v213_v51, %v142_v50  ;;  %v265_v60 = vpack.c.bf16 %v212_v53, %v141_v52  ;;  %v1431_v12 = vld [vmem:[#allocation5 + $0x118] sm:$0xff]   ;;  %v1438_v13 = vld [vmem:[#allocation5 + $0x180] sm:$0xff]   ;;  %v1432_v14 = vld [vmem:[#allocation5 + $0x150] sm:$0xff]  }
  0x48   :  { %1240 = vmatpush3.bf16.msra.mxu0 %v1395_v17  ;;  %v144_v63 = vcombine.high %v126_v55, %v140_v56  ;;  %v143_v0 = vcombine.low %v126_v55, %v140_v56  ;;  %v1439_v15 = vld [vmem:[#allocation2 + $0x8] ss:$14 sps:$4 sm:$0xff]   ;;  %v1441_v16 = vld [vmem:[#allocation2 + $0xc] ss:$14 sps:$4 sm:$0x33]   ;;  %v1453_v48 = vld [vmem:[#allocation7 + $0x28] sm:$0xff]  }
  0x49   :  { %1241 = vmatprep.subr.bf16.mxu0 %v1398_v20  ;;  %707 = vmatprep.mubr.bf16.mxu0 %v266_v59  ;;  %v1442_v17 = vld [vmem:[#allocation2 + $0x24] ss:$14 sps:$4 sm:$0xff]   ;;  %v1444_v18 = vld [vmem:[#allocation2 + $0x28] ss:$14 sps:$4 sm:$0x33]   ;;  %v155_v20 = vrot.slane %v1439_v15, %v1644_v36  ;;  %v1434_v24 = vld [vmem:[#allocation5 + $0x148] sm:$0xff]  }
  0x4a   :  { %1262 = vmatpush3.bf16.msra.mxu1 %v1397_v19  ;;  %v268_v4 = vpack.c.bf16 %v215_v2, %v144_v63  ;;  %v267_v5 = vpack.c.bf16 %v214_v3, %v143_v0  ;;  %v1433_v19 = vld [vmem:[#allocation5 + $0x110] sm:$0xff]   ;;  %v169_v25 = vrot.slane %v1442_v17, %v1644_v36  ;;  %v176_v26 = vrot.slane %v1444_v18, %v1644_v36  ;;  %v1435_v31 = vld [vmem:[#allocation5 + $0x108] sm:$0xff]   ;;  %v1436_v37 = vld [vmem:[#allocation5 + $0x140] sm:$0xff]  }
  0x4b   :  { %1263 = vmatprep.subr.bf16.mxu1 %v1400_v22  ;;  %v1445_v22 = vld [vmem:[#allocation2 + $0x40] ss:$14 sps:$4 sm:$0xff]   ;;  %v1454_v49 = vld [vmem:[#allocation7 + $0x20] sm:$0xff]  }
  0x4c   :  { %1242 = vmatpush3.bf16.msra.mxu0 %v1399_v21  ;;  %748 = vmatprep.mubr.bf16.mxu1 %v268_v4  ;;  %v162_v21 = vrot.slane %v1441_v16, %v1644_v36  ;;  %v1437_v41 = vld [vmem:[#allocation5 + $0x100] sm:$0xff]   ;;  %v177_v44 = vcombine.low %v155_v20, %v169_v25  ;;  %v1452_v47 = vld [vmem:[#allocation7 + $0x30] sm:$0xff]   ;;  %v1457_v52 = vld [vmem:[#allocation7 + $0x8] sm:$0xff]  }
  0x4d   :  { %1243 = vmatprep.subr.bf16.mxu0 %v1402_v27  ;;  %v1448_v27 = vld [vmem:[#allocation2 + $0x5c] ss:$14 sps:$4 sm:$0xff]   ;;  %v1455_v50 = vld [vmem:[#allocation7 + $0x18] sm:$0xff]   ;;  %v1461_v56 = vld [vmem:[#allocation8 + $0x28] sm:$0xff]  }
  0x4e   :  { %1264 = vmatpush3.bf16.msra.mxu1 %v1401_v23  ;;  %v1447_v23 = vld [vmem:[#allocation2 + $0x44] ss:$14 sps:$4 sm:$0x33]   ;;  %v179_v38 = vcombine.low %v162_v21, %v176_v26  ;;  %v1456_v51 = vld [vmem:[#allocation7 + $0x10] sm:$0xff]   ;;  %v1458_v53 = vld [vmem:[#allocation7] sm:$0xff]  }
  0x4f   :  { %1265 = vmatprep.subr.bf16.mxu1 %v1404_v29  ;;  %v226_v29 = vrot.slane %v1445_v22, %v1644_v36  ;;  %v1459_v54 = vld [vmem:[#allocation8 + $0x38] sm:$0xff]   ;;  %v1460_v55 = vld [vmem:[#allocation8 + $0x30] sm:$0xff]   ;;  %v1462_v57 = vld [vmem:[#allocation8 + $0x20] sm:$0xff]  }
  0x50   :  { %1244 = vmatpush3.bf16.msra.mxu0 %v1403_v28  ;;  %v1450_v28 = vld [vmem:[#allocation2 + $0x60] ss:$14 sps:$4 sm:$0x33]   ;;  %v1463_v59 = vld [vmem:[#allocation8 + $0x18] sm:$0xff]  }
  0x51   :  { %1245 = vmatprep.subr.bf16.mxu0 %v1406_v33  ;;  %v178_v33 = vcombine.high %v155_v20, %v169_v25 }
  0x52   :  { %1266 = vmatpush3.bf16.msra.mxu1 %v1405_v30  ;;  %v233_v30 = vrot.slane %v1447_v23, %v1644_v36 }
  0x53   :  { %1267 = vmatprep.subr.bf16.mxu1 %v1408_v35  ;;  %v247_v35 = vrot.slane %v1450_v28, %v1644_v36 }
  0x54   :  { %1246 = vmatpush3.bf16.msra.mxu0 %v1407_v34  ;;  %v240_v34 = vrot.slane %v1448_v27, %v1644_v36 }
  0x55   :  { %1275 = vmatprep.subr.bf16.mxu0 %v1418_v46  ;;  %v250_v40 = vcombine.low %v233_v30, %v247_v35  ;;  %v1451_v46 = vld [vmem:[#allocation7 + $0x38] sm:$0xff]   ;;  %v1466_v35 = vld [vmem:[#allocation8] sm:$0xff]  }
  0x56   :  { %1268 = vmatpush3.bf16.msra.mxu1 %v1417_v42  ;;  %v249_v39 = vcombine.high %v226_v29, %v240_v34  ;;  %v248_v45 = vcombine.low %v226_v29, %v240_v34  ;;  %v1465_v34 = vld [vmem:[#allocation8 + $0x8] sm:$0xff]  }
  0x57   :  { %1317 = vmatprep.subr.bf16.mxu1 %v1584_v58  ;;  %708 = vmatmul.mubr.bf16.vlgmr.msra.gmra.mxu0 %v265_v60  ;;  %v271_v43 = vpack.c.bf16 %v250_v40, %v179_v38 }
  0x58   :  { %1276 = vmatpush3.bf16.msra.mxu0 %v1423_v62  ;;  %v270_v42 = vpack.c.bf16 %v249_v39, %v178_v33  ;;  %v269_v36 = vpack.c.bf16 %v248_v45, %v177_v44  ;;  %v1464_v33 = vld [vmem:[#allocation8 + $0x10] sm:$0xff]  }
  0x59   :  { %1277 = vmatprep.subr.bf16.mxu0 %v1424_v1  ;;  %749 = vmatmul.mubr.bf16.vlgmr.msra.gmra.mxu1 %v267_v5  ;;  %v1157_v5 = vld [vmem:[%s1703_s4] ss:$0 sm:$0xff] }
  0x5a   :  { %1319 = vmatprep.mubr.msk.bf16.mxu1 %vm1585_vm0, %v1584_v58  ;;  %1318 = vmatpush3.bf16.msra.mxu1 %v1438_v13 }
  0x5b   :  { %1323 = vmatprep.subr.bf16.mxu1 %v1584_v58  ;;  %789 = vmatprep.mubr.bf16.mxu0 %v270_v42 }
  0x5c   :  { %1278 = vmatpush3.bf16.msra.mxu0 %v1425_v6 }
  0x5d   :  { %1279 = vmatprep.subr.bf16.mxu0 %v1426_v7 }
  0x60   :  { %1280 = vmatpush3.bf16.msra.mxu0 %v1427_v8 }
  0x61   :  { %1281 = vmatprep.subr.bf16.mxu0 %v1428_v9  ;;  %1320 = vmatmul.mubr.msk.bf16.vlgmr.msra.gmra.mxu1 %vm671_vm1, %v271_v43 }
  0x62   :  { %1339 = vmatprep.mubr.msk.bf16.mxu1 %vm1585_vm0, %v1584_v58  ;;  %1324 = vmatpush3.bf16.msra.mxu1 %v1451_v46 }
  0x63   :  { %1325 = vmatprep.subr.bf16.mxu1 %v1584_v58 }
  0x64   :  { %1282 = vmatpush3.bf16.msra.mxu0 %v1429_v10 }
  0x65   :  { %1283 = vmatprep.subr.bf16.mxu0 %v1430_v11 }
  0x66   :  { %1326 = vmatpush3.bf16.msra.mxu1 %v1452_v47 }
  0x67   :  { %1327 = vmatprep.subr.bf16.mxu1 %v1584_v58 }
  0x68   :  { %1284 = vmatpush3.bf16.msra.mxu0 %v1431_v12 }
  0x69   :  { %1285 = vmatprep.subr.bf16.mxu0 %v1432_v14 }
  0x6a   :  { %1328 = vmatpush3.bf16.msra.mxu1 %v1453_v48 }
  0x6b   :  { %1329 = vmatprep.subr.bf16.mxu1 %v1584_v58 }
  0x6c   :  { %1286 = vmatpush3.bf16.msra.mxu0 %v1433_v19 }
  0x6d   :  { %1287 = vmatprep.subr.bf16.mxu0 %v1434_v24 }
  0x6e   :  { %1330 = vmatpush3.bf16.msra.mxu1 %v1454_v49 }
  0x6f   :  { %1331 = vmatprep.subr.bf16.mxu1 %v1584_v58 }
  0x70   :  { %1288 = vmatpush3.bf16.msra.mxu0 %v1435_v31 }
  0x71   :  { %1289 = vmatprep.subr.bf16.mxu0 %v1436_v37  ;;  %v1208_v37 = vld [vmem:[%s1703_s4 + $0x1] ss:$0 sm:$0xff] }
  0x72   :  { %1332 = vmatpush3.bf16.msra.mxu1 %v1455_v50 }
  0x73   :  { %1333 = vmatprep.subr.bf16.mxu1 %v1584_v58 }
  0x74   :  { %1290 = vmatpush3.bf16.msra.mxu0 %v1437_v41 }
  0x75   :  { %1343 = vmatprep.subr.bf16.mxu0 %v1584_v58 }
  0x76   :  { %1334 = vmatpush3.bf16.msra.mxu1 %v1456_v51  ;;  %v1217_v51 = vld [vmem:[%s1703_s4 + $0x2] ss:$0 sm:$0xff] }
  0x77   :  { %790 = vmatmul.mubr.bf16.vlgmr.msra.gmra.mxu0 %v269_v36  ;;  %1335 = vmatprep.subr.bf16.mxu1 %v1584_v58 }
  0x78   :  { %1359 = vmatprep.mubr.msk.bf16.mxu0 %vm1585_vm0, %v1584_v58  ;;  %1344 = vmatpush3.bf16.msra.mxu0 %v1459_v54 }
  0x79   :  { %1345 = vmatprep.subr.bf16.mxu0 %v1584_v58 }
  0x7a   :  { %1336 = vmatpush3.bf16.msra.mxu1 %v1457_v52 }
  0x7b   :  { %1337 = vmatprep.subr.bf16.mxu1 %v1584_v58 }
  0x7c   :  { %1346 = vmatpush3.bf16.msra.mxu0 %v1460_v55 }
  0x7d   :  { %1347 = vmatprep.subr.bf16.mxu0 %v1584_v58 }
  0x7e   :  { %1338 = vmatpush3.bf16.msra.mxu1 %v1458_v53 }
  0x80   :  { %1348 = vmatpush3.bf16.msra.mxu0 %v1461_v56 }
  0x81   :  { %1349 = vmatprep.subr.bf16.mxu0 %v1584_v58 }
  0x84   :  { %1350 = vmatpush3.bf16.msra.mxu0 %v1462_v57 }
  0x85   :  { %1351 = vmatprep.subr.bf16.mxu0 %v1584_v58 }
  0x88   :  { %1352 = vmatpush3.bf16.msra.mxu0 %v1463_v59 }
  0x89   :  { %1353 = vmatprep.subr.bf16.mxu0 %v1584_v58 }
  0x8c   :  { %1354 = vmatpush3.bf16.msra.mxu0 %v1464_v33 }
  0x8d   :  { %1355 = vmatprep.subr.bf16.mxu0 %v1584_v58 }
  0x90   :  { %1356 = vmatpush3.bf16.msra.mxu0 %v1465_v34 }
  0x91   :  { %1357 = vmatprep.subr.bf16.mxu0 %v1584_v58  ;;  %v1586_v58 = vmov 1966171168  }
  0x92   :  { %v1075_v48 = vunpack.c.l.s4 %v1586_v58 }
  0x94   :  { %1358 = vmatpush3.bf16.msra.mxu0 %v1466_v35  ;;  %v1076_v50 = vunpack.c.0.s8 %v1075_v48 }
  0x96   :  { %v1079_v56 = vsub.s32 %v1076_v50, %v1641_v32 }
 0x117   :  { %v1247_v61 = vpop.f32.mrf.mxu0 }
 0x119   :  { %v1269_v60 = vpop.f32.mrf.mxu1  ;;  %v1248_v63 = vpop.f32.mrf.mxu0 }
 0x11a   :  { %v1249_v4 = vadd.f32 %v1248_v63, %v1247_v61 }
 0x11b   :  { %v1270_v62 = vpop.f32.mrf.mxu1  ;;  %v1250_v1 = vpop.f32.mrf.mxu0 }
 0x11c   :  { %v710_v9 = vadd.f32 %v1249_v4, %v1157_v5  ;;  %v1271_v10 = vadd.f32 %v1270_v62, %v1269_v60 }
 0x11d   :  { %v1272_v0 = vpop.f32.mrf.mxu1  ;;  %v1251_v6 = vpop.f32.mrf.mxu0 }
 0x11e   :  { %v1252_v11 = vadd.f32 %v1251_v6, %v1250_v1  ;;  %v751_v15 = vadd.f32 %v1271_v10, %v710_v9 }
 0x11f   :  { %v1273_v2 = vpop.f32.mrf.mxu1 }
 0x120   :  { %v713_v16 = vadd.f32 %v1252_v11, %v1157_v5  ;;  %v1274_v17 = vadd.f32 %v1273_v2, %v1272_v0 }
 0x121   :  { %v832_v3 = vpop.f32.mrf.mxu1 }
 0x122   :  { %v754_v22 = vadd.f32 %v1274_v17, %v713_v16 }
 0x123   :  { %v1321_v7 = vpop.f32.mrf.mxu1 }
 0x125   :  { %v835_v8 = vpop.f32.mrf.mxu1 }
 0x127   :  { %v1322_v13 = vpop.f32.mrf.mxu1 }
 0x137   :  { %v1291_v12 = vpop.f32.mrf.mxu0 }
 0x139   :  { %v1292_v14 = vpop.f32.mrf.mxu0 }
 0x13a   :  { %v1293_v18 = vadd.f32 %v1292_v14, %v1291_v12 }
 0x13b   :  { %v1294_v19 = vpop.f32.mrf.mxu0 }
 0x13c   :  { %v792_v20 = vadd.f32 %v1293_v18, %v751_v15 }
 0x13d   :  { %v1295_v21 = vpop.f32.mrf.mxu0 }
 0x13e   :  { %v833_v23 = vadd.f32 %v832_v3, %v792_v20  ;;  %v1296_v24 = vadd.f32 %v1295_v21, %v1294_v19 }
 0x140   :  { %v795_v25 = vadd.f32 %v1296_v24, %v754_v22  ;;  %v841_v26 = vmul.f32 0.01, %v833_v23  ;;  %vm839_vm2 = vcmp.gt.f32.partialorder %v833_v23, 0.0 }
 0x142   :  { %v836_v27 = vadd.f32 %v835_v8, %v795_v25  ;;  %v843_v29 = vsel %vm839_vm2, %v833_v23, %v841_v26 }
 0x144   :  { %vm840_vm3 = vcmp.gt.f32.partialorder %v836_v27, 0.0  ;;  %v842_v28 = vmul.f32 0.01, %v836_v27 }
 0x146   :  { %v844_v30 = vsel %vm840_vm3, %v836_v27, %v842_v28 }
 0x147   :  { %v845_v31 = vpack.c.bf16 %v844_v30, %v843_v29 }
 0x149   :  { %1340 = vmatmul.mubr.bf16.vlgmr.msra.gmra.mxu1 %v845_v31 }
 0x209   :  { %v948_v38 = vpop.f32.mrf.mxu1 }
 0x20a   :  { %v949_v39 = vadd.f32 %v1208_v37, %v948_v38 }
 0x20b   :  { %v1341_v40 = vpop.f32.mrf.mxu1 }
 0x20c   :  { %v957_v42 = vmul.f32 0.01, %v949_v39  ;;  %vm955_vm4 = vcmp.gt.f32.partialorder %v949_v39, 0.0 }
 0x20d   :  { %v951_v41 = vpop.f32.mrf.mxu1 }
 0x20e   :  { %v952_v43 = vadd.f32 %v1208_v37, %v951_v41  ;;  %v959_v36 = vsel %vm955_vm4, %v949_v39, %v957_v42 }
 0x20f   :  { %v1342_v44 = vpop.f32.mrf.mxu1 }
 0x210   :  { %vm956_vm5 = vcmp.gt.f32.partialorder %v952_v43, 0.0  ;;  %v958_v45 = vmul.f32 0.01, %v952_v43 }
 0x212   :  { %v960_v46 = vsel %vm956_vm5, %v952_v43, %v958_v45 }
 0x213   :  { %v961_v47 = vpack.c.bf16 %v960_v46, %v959_v36 }
 0x215   :  { %1360 = vmatmul.mubr.bf16.vlgmr.msra.gmra.mxu0 %v961_v47 }
 0x2d5   :  { %v1064_v49 = vpop.f32.mrf.mxu0 }
 0x2d6   :  { %v1065_v54 = vadd.f32 %v1217_v51, %v1064_v49 }
 0x2d7   :  { %v1361_v52 = vpop.f32.mrf.mxu0 }
 0x2d9   :  { %v1067_v53 = vpop.f32.mrf.mxu0 }
 0x2da   :  { %v1068_v55 = vadd.f32 %v1217_v51, %v1067_v53 }
 0x2db   :  { %v1362_v57 = vpop.f32.mrf.mxu0 }
 0x2dc   :  { %v1071_v59 = vpack.c.bf16 %v1068_v55, %v1065_v54  ;;  %v1226_v60 = vpack.c.bf16 %v1068_v55, %v1068_v55 }
 0x2de   :  { %v1080_v61 = vrot.slane %v1071_v59, %v1079_v56  ;;  %v1087_v62 = vrot.slane %v1226_v60, %v1079_v56 }
 0x2e0   :  { %v1088_v63 = vcombine.high %v1080_v61, %v1080_v61  ;;  %v1089_v0 = vcombine.high %v1087_v62, %v1087_v62  ;;  %v1096_v1 = vrot.slane %v1080_v61, %v1079_v56  ;;  %v1103_v2 = vrot.slane %v1087_v62, %v1079_v56  ;;  %1227 = vst.sshfl [vmem:[#allocation10] sm:$0x1 pattern:$0x73625140] %v1080_v61 }
 0x2e1   :  { %1229 = vst.sshfl [vmem:[#allocation10 + $0x4] sm:$0x1 pattern:$0x73625140] %v1087_v62 }
 0x2e2   :  { %v1110_v3 = vrot.slane %v1088_v63, %v1079_v56  ;;  %v1117_v4 = vrot.slane %v1089_v0, %v1079_v56  ;;  %v1118_v5 = vcombine.high %v1096_v1, %v1096_v1  ;;  %v1119_v6 = vcombine.high %v1103_v2, %v1103_v2  ;;  %1228 = vst.sshfl [vmem:[#allocation10 + $0x1] sm:$0x1 pattern:$0x73625140] %v1088_v63 }
 0x2e3   :  { %1230 = vst.sshfl [vmem:[#allocation10 + $0x5] sm:$0x1 pattern:$0x73625140] %v1089_v0 }
 0x2e4   :  { %v1120_v7 = vcombine.high %v1110_v3, %v1110_v3  ;;  %v1121_v8 = vcombine.high %v1117_v4, %v1117_v4  ;;  %1132 = vst [vmem:[#allocation10 + $0x2] sm:$0x1] %v1118_v5  ;;  %1136 = vst [vmem:[#allocation10 + $0x6] sm:$0x1] %v1119_v6 }
 0x2e6   :  { %1133 = vst [vmem:[#allocation10 + $0x3] sm:$0x1] %v1120_v7  ;;  %1137 = vst [vmem:[#allocation10 + $0x7] sm:$0x1] %v1121_v8 }
 0x2e7   :  { %1142 = vsyncadd [#allocation4], 112  ;;  %s1587_s4 = smov [#allocation10]  }
 0x2e8   :  { %s1143_s20 = sshll.u32 %s1587_s4, 4  ;;  %s1144_s20 = int_to_ptr.vmem [resolvable:$true] %s1143_s20 }
 0x2e9   :  { %s1547_s21 = scalar_lea.vmem %s1144_s20, 16  ;;  %s1551_s22 = scalar_lea.vmem %s1144_s20, 128 }
 0x2ea   :  { %p1548_p6 = scmp.ne.s32.totalorder %s1144_s20, %s1547_s21  ;;  %p1552_p7 = scmp.lt.s32.totalorder %s1144_s20, %s1144_s20 }
 0x2eb   :  { %p1553_p8 = scmp.lt.s32.totalorder %s1551_s22, %s1547_s21 }
 0x2ed   :  { %p1554_p9 = por %p1553_p8, %p1552_p7 }
 0x2ef   :  { %p1555_p10 = pnand %p1554_p9, %p1548_p6 }
 0x2f1   :  { %1558 = shalt.err (!%p1555_p10)
}
 0x2f2   :  { %s1588_s23 = smov 16   ;;  %s1589_s24 = smov 1  }
 0x2f3   :  { %1149 = dma.vmem_to_hbm [thread:$0]  %s1144_s20, 16, %s1704_s5, [#allocation4], %s1588_s23, %s1588_s23, %s1589_s24  }
 0x2f4   :  { %1573 = dma.done.wait [#allocation4], 128  }
 0x2f5   :  { %1574 = vsyncadd [#allocation4], 4294967168 }
 0x2f6   :  { %1153 = vsyncpa [#allocation3], 1 }
 0x2f7   :  { %1154 = vsyncpa [#allocation6], 1 }
 0x2f8   :  { %1155 = vsyncpa [#allocation9], 1 }
 0x2f9   :  { %1156 = vsyncpa [#allocation4], 1 }

</bundles_post_ra>
